<compile_context>
chip_gen: v7x
topology: tpu7x:2x2x1
jax: 0.10.0
libtpu: 0.0.40
codegen_flags: <defaults>
</compile_context>

<pallas_src>
import jax
import jax.numpy as jnp
from jax.experimental import pallas as pl
from jax.experimental.pallas import tpu as pltpu

IMAGE_DIM = 32
AUDIO_DIM = 32
IN_DIM = IMAGE_DIM + AUDIO_DIM          # 64
OUT_DIM = 128
N_CLASSES = 21
PADDED_CLASSES = 128                    # lane-dense output width
MAX_TILE_B = 1024                       # cap: keeps per-step VMEM ~4 MiB (v7x-safe)


def _round_up(n, m):
    return ((n + m - 1) // m) * m


def _choose_tile_b(B, *, max_tile=MAX_TILE_B, min_steps=4):
    """Batch-tile size: multiple of 8; for larger batches an even (>=4) step
    count so the pipeline overlaps DMA with compute and v7x splits the grid
    across its two TensorCores.  Resulting batch padding is < 8 rows/step."""
    Bp8 = _round_up(max(B, 1), 8)
    if Bp8 <= 256:
        return Bp8                       # tiny batch: one tile, minimal padding
    steps = max(pl.cdiv(Bp8, max_tile), min_steps)
    if steps % 2:
        steps += 1                       # even step count -> clean v7x 2-TC split
    return _round_up(pl.cdiv(Bp8, steps), 8)


def _mmc_kernel(x_ref, w_in_ref, b_in_ref, w_out_ref, b_out_ref, out_ref):
    # x: (TILE_B, 64) -> [v | gamma | beta] : (TILE_B, 384) in one MXU matmul.
    vgb = jnp.dot(x_ref[...], w_in_ref[...],
                  preferred_element_type=jnp.float32) + b_in_ref[...]
    v = vgb[:, :OUT_DIM]                       # 128-lane-aligned splits
    gamma = vgb[:, OUT_DIM:2 * OUT_DIM]
    beta = vgb[:, 2 * OUT_DIM:]
    h = jnp.maximum(gamma * v + beta, 0.0)     # FiLM + ReLU (f32)
    h = h.astype(w_out_ref.dtype)              # bf16 path feeds MXU natively
    # fused classifier (w_fuse @ w_cls folded, zero-padded to 128 lanes)
    out_ref[...] = (jnp.dot(h, w_out_ref[...],
                            preferred_element_type=jnp.float32)
                    + b_out_ref[...])


def multimodal_classifier(x, folded, *, trim=True):
    """x: (B, 64) -> (B, N_CLASSES) f32 (or (B, 128) lane-padded if trim=False)."""
    B = x.shape[0]
    tb = _choose_tile_b(B)
    Bp = _round_up(max(B, 1), tb)

    x = x.astype(folded["w_in"].dtype)         # no-op for the default f32 path
    if Bp != B:
        # Bounded padding (< 8 rows per grid step), not a whole-tile pad.
        x = jnp.pad(x, ((0, Bp - B), (0, 0)))

    grid = (Bp // tb,)
    in_specs = [
        pl.BlockSpec((tb, IN_DIM), lambda i: (i, 0)),                 # x tile
        pl.BlockSpec((IN_DIM, 3 * OUT_DIM), lambda i: (0, 0)),        # W_in (resident)
        pl.BlockSpec((1, 3 * OUT_DIM), lambda i: (0, 0)),             # b_in
        pl.BlockSpec((OUT_DIM, PADDED_CLASSES), lambda i: (0, 0)),    # W_out
        pl.BlockSpec((1, PADDED_CLASSES), lambda i: (0, 0)),          # b_out
    ]
    out_specs = pl.BlockSpec((tb, PADDED_CLASSES), lambda i: (i, 0))

    # Advisory cost so XLA can schedule surrounding ops around the kernel.
    flops = Bp * (2 * IN_DIM * 3 * OUT_DIM + 2 * OUT_DIM * PADDED_CLASSES)
    w_bytes = sum(int(a.size) * a.dtype.itemsize
                  for a in (folded["w_in"], folded["b_in"],
                            folded["w_out"], folded["b_out"]))
    bytes_accessed = Bp * (IN_DIM * x.dtype.itemsize + PADDED_CLASSES * 4) + w_bytes

    out = pl.pallas_call(
        _mmc_kernel,
        out_shape=jax.ShapeDtypeStruct((Bp, PADDED_CLASSES), jnp.float32),
        grid=grid,
        in_specs=in_specs,
        out_specs=out_specs,
        compiler_params=pltpu.CompilerParams(
            dimension_semantics=("parallel",)),
        cost_estimate=pl.CostEstimate(flops=flops, transcendentals=0,
                                      bytes_accessed=bytes_accessed),
    )(x, folded["w_in"], folded["b_in"], folded["w_out"], folded["b_out"])

    if Bp != B:
        out = out[:B]
    if trim:
        # Lanes >= N_CLASSES are exact zeros; keep trim=False to hand the
        # padded (B, 128) block to the consumer and skip this extra HBM pass.
        out = out[:, :N_CLASSES]
    return out


def init_params(key):
    """Deterministic synthetic parameters (Linear layers store W as (in, out))."""
    ks = jax.random.split(key, 10)

    def lin(kw, kb, fan_in, fan_out):
        bound = 1.0 / jnp.sqrt(fan_in)
        w = jax.random.uniform(kw, (fan_in, fan_out), jnp.float32, -bound, bound)
        b = jax.random.uniform(kb, (1, fan_out), jnp.float32, -bound, bound)
        return w, b

    w_img, b_img = lin(ks[0], ks[1], IMAGE_DIM, OUT_DIM)
    w_aud, b_aud = lin(ks[2], ks[3], AUDIO_DIM, OUT_DIM)
    w_film, b_film = lin(ks[4], ks[5], OUT_DIM, 2 * OUT_DIM)
    w_fuse, b_fuse = lin(ks[6], ks[7], OUT_DIM, OUT_DIM)
    w_cls, b_cls = lin(ks[8], ks[9], OUT_DIM, N_CLASSES)
    return dict(w_img=w_img, b_img=b_img,
                w_aud=w_aud, b_aud=b_aud,
                w_film=w_film, b_film=b_film,
                w_fuse=w_fuse, b_fuse=b_fuse,
                w_cls=w_cls, b_cls=b_cls)


def fold_params(p):
    """One-time (f32) algebraic folding of the linear chains.

    W_in  (64, 384)  = blockdiag(w_img, w_aud @ w_film)
    b_in  (1, 384)   = [b_img | b_aud @ w_film + b_film]
    W_out (128, 128) = (w_fuse @ w_cls) zero-padded to 128 output lanes
    b_out (1, 128)   = (b_fuse @ w_cls + b_cls) zero-padded
    """
    w_aud_film = p["w_aud"] @ p["w_film"]                    # (32, 256)
    b_aud_film = p["b_aud"] @ p["w_film"] + p["b_film"]      # (1, 256)

    w_in = jnp.zeros((IN_DIM, 3 * OUT_DIM), jnp.float32)
    w_in = w_in.at[:IMAGE_DIM, :OUT_DIM].set(p["w_img"])
    w_in = w_in.at[IMAGE_DIM:, OUT_DIM:].set(w_aud_film)
    b_in = jnp.concatenate([p["b_img"], b_aud_film], axis=1)  # (1, 384)

    w_out_raw = p["w_fuse"] @ p["w_cls"]                      # (128, 21)
    b_out_raw = p["b_fuse"] @ p["w_cls"] + p["b_cls"]         # (1, 21)
    w_out = jnp.zeros((OUT_DIM, PADDED_CLASSES), jnp.float32)
    w_out = w_out.at[:, :N_CLASSES].set(w_out_raw)
    b_out = jnp.zeros((1, PADDED_CLASSES), jnp.float32)
    b_out = b_out.at[:, :N_CLASSES].set(b_out_raw)

    return dict(w_in=w_in, b_in=b_in, w_out=w_out, b_out=b_out)


def cast_folded(folded, dtype):
    """Cast the MXU operands (weights only) to `dtype` (e.g. bf16 on v6e/v7x).
    Biases stay f32; accumulation stays f32 via preferred_element_type."""
    return dict(folded,
                w_in=folded["w_in"].astype(dtype),
                w_out=folded["w_out"].astype(dtype))


def reference_forward(x, p):
    """Pure-JAX reference of the original (un-folded) forward pass."""
    half = x.shape[1] // 2
    v = x[:, :half] @ p["w_img"] + p["b_img"]
    a = x[:, half:] @ p["w_aud"] + p["b_aud"]
    gb = a @ p["w_film"] + p["b_film"]
    gamma, beta = gb[:, :OUT_DIM], gb[:, OUT_DIM:]
    h = jnp.maximum(gamma * v + beta, 0.0)
    fused = h @ p["w_fuse"] + p["b_fuse"]
    return fused @ p["w_cls"] + p["b_cls"]


if __name__ == "__main__":
    key = jax.random.PRNGKey(0)
    kx, kp = jax.random.split(key)

    B = 2
    x = jax.random.normal(kx, (B, IN_DIM), jnp.float32)
    params = init_params(kp)
    folded = fold_params(params)          # one-time precompute, not per-call

    fwd = jax.jit(multimodal_classifier)

    # Default f32 path: must match the f32 reference to 1e-4.
    out = jax.block_until_ready(fwd(x, folded))
    ref = reference_forward(x, params)
    assert out.shape == (B, N_CLASSES)
    assert jnp.allclose(out, ref, atol=1e-4, rtol=1e-4), "f32 mismatch vs JAX reference"

    # Optional bf16-operand path (MXU-native on v6e/v7x); f32 accumulation keeps
    # it close to the reference but outside the strict 1e-4 band.
    out_bf16 = jax.block_until_ready(fwd(x, cast_folded(folded, jnp.bfloat16)))
    assert out_bf16.shape == (B, N_CLASSES)
    assert jnp.allclose(out_bf16, ref, atol=5e-2, rtol=5e-2), "bf16 mismatch vs JAX reference"

    print("KERNEL_OK")
</pallas_src>

<mosaic_0001>
module attributes {stable_mosaic.version = 11 : i64} {
  func.func @_mmc_kernel(%arg0: i32, %arg1: memref<8x64xf32, #tpu.memory_space<vmem>>, %arg2: memref<64x384xf32, #tpu.memory_space<vmem>>, %arg3: memref<1x384xf32, #tpu.memory_space<vmem>>, %arg4: memref<128x128xf32, #tpu.memory_space<vmem>>, %arg5: memref<1x128xf32, #tpu.memory_space<vmem>>, %arg6: memref<8x128xf32, #tpu.memory_space<vmem>>) attributes {dimension_semantics = [#tpu.dimension_semantics<parallel>], iteration_bounds = array<i64: 1>, scalar_prefetch = 0 : i64, scratch_operands = 0 : i64, tpu.core_type = #tpu.core_type<tc>, window_params = [{transform_indices = @transform_0, window_bounds = array<i64: 8, 64>}, {pipeline_mode = #tpu.pipeline_mode<synchronous>, transform_indices = @transform_1, window_bounds = array<i64: 64, 384>}, {pipeline_mode = #tpu.pipeline_mode<synchronous>, transform_indices = @transform_2, window_bounds = array<i64: 1, 384>}, {pipeline_mode = #tpu.pipeline_mode<synchronous>, transform_indices = @transform_3, window_bounds = array<i64: 128, 128>}, {pipeline_mode = #tpu.pipeline_mode<synchronous>, transform_indices = @transform_4, window_bounds = array<i64: 1, 128>}, {transform_indices = @transform_5, window_bounds = array<i64: 8, 128>}]} {
    %c0 = arith.constant 0 : index
    %c0_0 = arith.constant 0 : index
    %0 = vector.load %arg1[%c0, %c0_0] : memref<8x64xf32, #tpu.memory_space<vmem>>, vector<8x64xf32>
    %c0_1 = arith.constant 0 : index
    %c0_2 = arith.constant 0 : index
    %1 = vector.load %arg2[%c0_1, %c0_2] : memref<64x384xf32, #tpu.memory_space<vmem>>, vector<64x384xf32>
    %cst = arith.constant dense<0.000000e+00> : vector<8x384xf32>
    %2 = tpu.matmul %0, %1, %cst {dimension_numbers = #tpu.dot_dimension_numbers<[1], [0], [0], [1], [0, 0, 1, 1], [], []>} : vector<8x64xf32>, vector<64x384xf32>, vector<8x384xf32> -> vector<8x384xf32>
    %c0_3 = arith.constant 0 : index
    %c0_4 = arith.constant 0 : index
    %3 = vector.load %arg3[%c0_3, %c0_4] : memref<1x384xf32, #tpu.memory_space<vmem>>, vector<1x384xf32>
    %4 = vector.broadcast %3 : vector<1x384xf32> to vector<8x384xf32>
    %5 = arith.addf %2, %4 : vector<8x384xf32>
    %6 = vector.extract_strided_slice %5 {offsets = [0, 0], sizes = [8, 128], strides = [1, 1]} : vector<8x384xf32> to vector<8x128xf32>
    %7 = vector.extract_strided_slice %5 {offsets = [0, 128], sizes = [8, 128], strides = [1, 1]} : vector<8x384xf32> to vector<8x128xf32>
    %8 = vector.extract_strided_slice %5 {offsets = [0, 256], sizes = [8, 128], strides = [1, 1]} : vector<8x384xf32> to vector<8x128xf32>
    %9 = arith.mulf %7, %6 : vector<8x128xf32>
    %10 = arith.addf %9, %8 : vector<8x128xf32>
    %cst_5 = arith.constant 0.000000e+00 : f32
    %11 = vector.broadcast %cst_5 : f32 to vector<8x128xf32>
    %12 = arith.maximumf %10, %11 : vector<8x128xf32>
    %c0_6 = arith.constant 0 : index
    %c0_7 = arith.constant 0 : index
    %13 = vector.load %arg4[%c0_6, %c0_7] : memref<128x128xf32, #tpu.memory_space<vmem>>, vector<128x128xf32>
    %cst_8 = arith.constant dense<0.000000e+00> : vector<8x128xf32>
    %14 = tpu.matmul %12, %13, %cst_8 {dimension_numbers = #tpu.dot_dimension_numbers<[1], [0], [0], [1], [0, 0, 1, 1], [], []>} : vector<8x128xf32>, vector<128x128xf32>, vector<8x128xf32> -> vector<8x128xf32>
    %c0_9 = arith.constant 0 : index
    %c0_10 = arith.constant 0 : index
    %15 = vector.load %arg5[%c0_9, %c0_10] : memref<1x128xf32, #tpu.memory_space<vmem>>, vector<1x128xf32>
    %16 = vector.broadcast %15 : vector<1x128xf32> to vector<8x128xf32>
    %17 = arith.addf %14, %16 : vector<8x128xf32>
    %c0_11 = arith.constant 0 : index
    %c0_12 = arith.constant 0 : index
    %18 = vector.load %arg6[%c0_11, %c0_12] : memref<8x128xf32, #tpu.memory_space<vmem>>, vector<8x128xf32>
    tpu.vector_store %arg6[%c0_11, %c0_12], %17 {strides = array<i32>} : memref<8x128xf32, #tpu.memory_space<vmem>>, vector<8x128xf32>,
    return
  }
  func.func @transform_0(%arg0: i32) -> (i32, i32) {
    %c0_i32 = arith.constant 0 : i32
    %c0_i32_0 = arith.constant 0 : i32
    return %arg0, %c0_i32 : i32, i32
  }
  func.func @transform_1(%arg0: i32) -> (i32, i32) {
    %c0_i32 = arith.constant 0 : i32
    %c0_i32_0 = arith.constant 0 : i32
    %c0_i32_1 = arith.constant 0 : i32
    return %c0_i32, %c0_i32_0 : i32, i32
  }
  func.func @transform_2(%arg0: i32) -> (i32, i32) {
    %c0_i32 = arith.constant 0 : i32
    %c0_i32_0 = arith.constant 0 : i32
    %c0_i32_1 = arith.constant 0 : i32
    return %c0_i32, %c0_i32_0 : i32, i32
  }
  func.func @transform_3(%arg0: i32) -> (i32, i32) {
    %c0_i32 = arith.constant 0 : i32
    %c0_i32_0 = arith.constant 0 : i32
    %c0_i32_1 = arith.constant 0 : i32
    return %c0_i32, %c0_i32_0 : i32, i32
  }
  func.func @transform_4(%arg0: i32) -> (i32, i32) {
    %c0_i32 = arith.constant 0 : i32
    %c0_i32_0 = arith.constant 0 : i32
    %c0_i32_1 = arith.constant 0 : i32
    return %c0_i32, %c0_i32_0 : i32, i32
  }
  func.func @transform_5(%arg0: i32) -> (i32, i32) {
    %c0_i32 = arith.constant 0 : i32
    %c0_i32_0 = arith.constant 0 : i32
    return %arg0, %c0_i32 : i32, i32
  }
}

</mosaic_0001>

<bundles_post_ra>
// kernel: multimodal_classifier.1
= control target key start
LH: loop header
LB: loop body
LE: loop exit
PB: predicated region body
PF: predicated region fallthrough
CT: control target
= control target key end

     0   :  { %10 = vsyncpa [#allocation3], 0  ;;  %s621_s0 = inlined_call_operand.vmem [shape: f32[8,64], index: 0, kind: input, shape index: {}]   ;;  %s622_s1 = inlined_call_operand.hbm [shape: f32[64,384], index: 1, kind: input, shape index: {}]   ;;  %s623_s2 = inlined_call_operand.vmem [shape: f32[1,384], index: 2, kind: input, shape index: {}]   ;;  %s624_s3 = inlined_call_operand.hbm [shape: f32[128,128], index: 3, kind: input, shape index: {}]   ;;  %s625_s4 = inlined_call_operand.vmem [shape: f32[1,128], index: 4, kind: input, shape index: {}]   ;;  %s626_s5 = inlined_call_operand.vmem [shape: f32[8,128], index: 5, kind: output, shape index: {}]  }
   0x1   :  { %11 = vsyncpa [#allocation5], 0  ;;  %s530_s18 = smov [#allocation2]   ;;  %s482_s22 = scalar_lea.hbm %s622_s1, 3072 }
   0x2   :  { %s19_s19 = sshll.u32 %s530_s18, 4  ;;  %p483_p0 = scmp.ne.s32.totalorder %s622_s1, %s482_s22  ;;  %s20_s19 = int_to_ptr.vmem [resolvable:$true] %s19_s19 }
   0x3   :  { %p486_p1 = scmp.lt.u32.totalorder %s482_s22, %s622_s1 }
   0x5   :  { %p488_p2 = pnand %p486_p1, %p483_p0 }
   0x7   :  { %491 = shalt.err (!%p488_p2)
}
   0x8   :  { %s492_s27 = scalar_lea.vmem %s20_s19, 3072  ;;  %p497_p4 = scmp.lt.s32.totalorder %s20_s19, %s20_s19 }
   0x9   :  { %p493_p3 = scmp.ne.s32.totalorder %s20_s19, %s492_s27  ;;  %p498_p5 = scmp.lt.s32.totalorder %s492_s27, %s492_s27 }
   0xb   :  { %p499_p6 = por %p498_p5, %p497_p4 }
   0xd   :  { %p500_p7 = pnand %p499_p6, %p493_p3 }
   0xf   :  { %503 = shalt.err (!%p500_p7)
}
  0x10   :  { %s531_s28 = smov 384   ;;  %s532_s29 = smov 24  }
  0x11   :  { %25 = dma.hbm_to_vmem [thread:$0]  %s622_s1, 3072, %s20_s19, [#allocation3], %s531_s28, %s531_s28, %s532_s29  }
  0x12   :  { %s533_s7 = smov [#allocation4]   ;;  %s504_s11 = scalar_lea.hbm %s624_s3, 2048 }
  0x13   :  { %s33_s8 = sshll.u32 %s533_s7, 4  ;;  %p505_p8 = scmp.ne.s32.totalorder %s624_s3, %s504_s11  ;;  %s34_s8 = int_to_ptr.vmem [resolvable:$true] %s33_s8 }
  0x14   :  { %p508_p9 = scmp.lt.u32.totalorder %s504_s11, %s624_s3 }
  0x16   :  { %p510_p10 = pnand %p508_p9, %p505_p8 }
  0x18   :  { %513 = shalt.err (!%p510_p10)
}
  0x19   :  { %s514_s16 = scalar_lea.vmem %s34_s8, 2048  ;;  %p519_p12 = scmp.lt.s32.totalorder %s34_s8, %s34_s8 }
  0x1a   :  { %p515_p11 = scmp.ne.s32.totalorder %s34_s8, %s514_s16  ;;  %p520_p13 = scmp.lt.s32.totalorder %s514_s16, %s514_s16 }
  0x1c   :  { %p521_p0 = por %p520_p13, %p519_p12 }
  0x1e   :  { %p522_p1 = pnand %p521_p0, %p515_p11 }
  0x20   :  { %525 = shalt.err (!%p522_p1)
}
  0x21   :  { %s534_s1 = smov 128   ;;  %s535_s17 = smov 8  }
  0x22   :  { %39 = dma.hbm_to_vmem [thread:$0]  %s624_s3, 2048, %s34_s8, [#allocation5], %s534_s1, %s534_s1, %s535_s17  }
  0x23   :  { %526 = dma.done.wait [#allocation3], 3072  }
  0x24   :  { %527 = vsyncadd [#allocation3], 4294964224 }
  0x25   :  { %528 = dma.done.wait [#allocation5], 2048  }
  0x26   :  { %529 = vsyncadd [#allocation5], 4294965248  ;;  %v536_v0 = vmov 0.0   ;;  %v537_v1 = vmov 0.0|0.0   ;;  %vm538_vm0 = vmmov 0   ;;  %v50_v2 = vld [vmem:[#allocation2 + $0x8] sm:$0xff]  ;;  %v75_v63 = vlaneseq }
  0x27   :  { %158 = vmatprep.mubr.f32.mxu1 %v536_v0  ;;  %449 = vmatprep.subr.bf16.mxu0 %v537_v1  ;;  %v53_v3 = vld [vmem:[#allocation2 + $0x20] sm:$0xff]  ;;  %v52_v6 = vld [vmem:[#allocation2 + $0x18] sm:$0xff]  ;;  %v59_v8 = vld [vmem:[#allocation2 + $0x50] sm:$0xff]  ;;  %vm90_vm1 = vcmask 523264  }
  0x28   :  { %418 = vmatprep.mubr.msk.f32.mxu0 %vm538_vm0, %v536_v0  ;;  %v49_v4 = vld [vmem:[#allocation2] sm:$0xff]  ;;  %v421_v5 = vpack.c.bf16 %v53_v3, %v50_v2  ;;  %v56_v7 = vld [vmem:[#allocation2 + $0x38] sm:$0xff]  ;;  %v55_v11 = vld [vmem:[#allocation2 + $0x30] sm:$0xff] }
  0x29   :  { %v423_v9 = vpack.c.bf16 %v52_v6, %v49_v4  ;;  %v425_v10 = vpack.c.bf16 %v59_v8, %v56_v7  ;;  %v58_v12 = vld [vmem:[#allocation2 + $0x48] sm:$0xff]  ;;  %v65_v14 = vld [vmem:[#allocation2 + $0x80] sm:$0xff]  ;;  %v64_v18 = vld [vmem:[#allocation2 + $0x78] sm:$0xff] }
  0x2a   :  { %v62_v13 = vld [vmem:[#allocation2 + $0x68] sm:$0xff]  ;;  %422 = vmatprep.subr.bf16.mxu1 %v421_v5  ;;  %v427_v15 = vpack.c.bf16 %v58_v12, %v55_v11  ;;  %v61_v17 = vld [vmem:[#allocation2 + $0x60] sm:$0xff]  ;;  %v68_v19 = vld [vmem:[#allocation2 + $0x98] sm:$0xff] }
  0x2b   :  { %424 = vmatpush1.bf16.msra.mxu1 %v423_v9  ;;  %v429_v16 = vpack.c.bf16 %v65_v14, %v62_v13  ;;  %v71_v20 = vld [vmem:[#allocation2 + $0xb0] sm:$0xff]  ;;  %v431_v21 = vpack.c.bf16 %v64_v18, %v61_v17  ;;  %v238_v23 = vld [vmem:[#allocation4] sm:$0xff]  ;;  %v239_v24 = vld [vmem:[#allocation4 + $0x8] sm:$0xff] }
  0x2c   :  { %426 = vmatprep.subr.bf16.mxu1 %v425_v10  ;;  %v67_v22 = vld [vmem:[#allocation2 + $0x90] sm:$0xff]  ;;  %v433_v25 = vpack.c.bf16 %v71_v20, %v68_v19  ;;  %v70_v26 = vld [vmem:[#allocation2 + $0xa8] sm:$0xff]  ;;  %v450_v27 = vpack.c.bf16 %v239_v24, %v238_v23  ;;  %v241_v29 = vld [vmem:[#allocation4 + $0x18] sm:$0xff] }
  0x2d   :  { %v240_v28 = vld [vmem:[#allocation4 + $0x10] sm:$0xff]  ;;  %v435_v31 = vpack.c.bf16 %v70_v26, %v67_v22  ;;  %v54_v33 = vld [vmem:[#allocation2 + $0x28] sm:$0xff]  ;;  %v48_v34 = vld [vmem:[%s621_s0] sm:$0xff] }
  0x2e   :  { %451 = vmatpush3.bf16.msra.mxu0 %v450_v27  ;;  %v453_v30 = vpack.c.bf16 %v241_v29, %v240_v28  ;;  %v51_v32 = vld [vmem:[#allocation2 + $0x10] sm:$0xff]  ;;  %v57_v36 = vld [vmem:[#allocation2 + $0x40] sm:$0xff]  ;;  %v60_v37 = vld [vmem:[#allocation2 + $0x58] sm:$0xff] }
  0x2f   :  { %428 = vmatpush1.bf16.msra.mxu1 %v427_v15  ;;  %452 = vmatprep.subr.bf16.mxu0 %v537_v1  ;;  %v438_v35 = vpack.c.bf16 %v54_v33, %v51_v32  ;;  %v441_v38 = vpack.c.bf16 %v60_v37, %v57_v36  ;;  %v63_v39 = vld [vmem:[#allocation2 + $0x70] sm:$0xff]  ;;  %v66_v40 = vld [vmem:[#allocation2 + $0x88] sm:$0xff]  ;;  %v69_v42 = vld [vmem:[#allocation2 + $0xa0] sm:$0xff] }
  0x30   :  { %430 = vmatprep.subr.bf16.mxu1 %v429_v16  ;;  %v444_v41 = vpack.c.bf16 %v66_v40, %v63_v39  ;;  %v72_v43 = vld [vmem:[#allocation2 + $0xb8] sm:$0xff]  ;;  %v242_v45 = vld [vmem:[#allocation4 + $0x20] sm:$0xff]  ;;  %v243_v46 = vld [vmem:[#allocation4 + $0x28] sm:$0xff] }
  0x31   :  { %v447_v44 = vpack.c.bf16 %v72_v43, %v69_v42  ;;  %v456_v47 = vpack.c.bf16 %v243_v46, %v242_v45  ;;  %v244_v48 = vld [vmem:[#allocation4 + $0x30] sm:$0xff]  ;;  %v245_v49 = vld [vmem:[#allocation4 + $0x38] sm:$0xff]  ;;  %v246_v51 = vld [vmem:[#allocation4 + $0x40] sm:$0xff] }
  0x32   :  { %454 = vmatpush3.bf16.msra.mxu0 %v453_v30  ;;  %v459_v50 = vpack.c.bf16 %v245_v49, %v244_v48  ;;  %v247_v52 = vld [vmem:[#allocation4 + $0x48] sm:$0xff]  ;;  %v248_v54 = vld [vmem:[#allocation4 + $0x50] sm:$0xff]  ;;  %v249_v55 = vld [vmem:[#allocation4 + $0x58] sm:$0xff] }
  0x33   :  { %432 = vmatpush1.bf16.msra.mxu1 %v431_v21  ;;  %455 = vmatprep.subr.bf16.mxu0 %v537_v1  ;;  %v462_v53 = vpack.c.bf16 %v247_v52, %v246_v51  ;;  %v465_v56 = vpack.c.bf16 %v249_v55, %v248_v54  ;;  %v250_v57 = vld [vmem:[#allocation4 + $0x60] sm:$0xff]  ;;  %v251_v58 = vld [vmem:[#allocation4 + $0x68] sm:$0xff]  ;;  %v252_v60 = vld [vmem:[#allocation4 + $0x70] sm:$0xff] }
  0x34   :  { %434 = vmatprep.subr.bf16.mxu1 %v433_v25  ;;  %v468_v59 = vpack.c.bf16 %v251_v58, %v250_v57  ;;  %v253_v61 = vld [vmem:[#allocation4 + $0x78] sm:$0xff]  ;;  %v73_v3 = vld [vmem:[%s623_s2] sm:$0x7] }
  0x35   :  { %v471_v62 = vpack.c.bf16 %v253_v61, %v252_v60  ;;  %v340_v18 = vld [vmem:[%s625_s4] ss:$0 sm:$0xff] }
  0x36   :  { %457 = vmatpush3.bf16.msra.mxu0 %v456_v47 }
  0x37   :  { %436 = vmatpush1.bf16.msra.mxu1 %v435_v31  ;;  %458 = vmatprep.subr.bf16.mxu0 %v537_v1 }
  0x38   :  { %437 = vmatprep.subr.bf16.mxu1 %v537_v1 }
  0x3a   :  { %338 = vmatmul.mubr.msk.f32.vlgmr.msra.gmra.mrb[0].mxu1 %vm90_vm1, %v48_v34  ;;  %460 = vmatpush3.bf16.msra.mxu0 %v459_v50 }
  0x3b   :  { %439 = vmatpush3.bf16.msra.mxu1 %v438_v35  ;;  %383 = vmatprep.mubr.msk.f32.mxu1 %vm538_vm0, %v536_v0  ;;  %v76_v0 = vshrl.u32 %v75_v63, 7 }
  0x3c   :  { %440 = vmatprep.subr.bf16.mxu1 %v537_v1  ;;  %461 = vmatprep.subr.bf16.mxu0 %v537_v1 }
  0x3d   :  { %v77_v2 = vsub.s32 0, %v76_v0  ;;  %v81_v4 = vsub.s32 1, %v76_v0 }
  0x3e   :  { %463 = vmatpush3.bf16.msra.mxu0 %v462_v53 }
  0x3f   :  { %442 = vmatpush3.bf16.msra.mxu1 %v441_v38  ;;  %464 = vmatprep.subr.bf16.mxu0 %v537_v1  ;;  %v78_v5 = vrot.slane %v73_v3, %v77_v2  ;;  %v82_v6 = vrot.slane %v73_v3, %v81_v4 }
  0x40   :  { %443 = vmatprep.subr.bf16.mxu1 %v537_v1 }
  0x42   :  { %466 = vmatpush3.bf16.msra.mxu0 %v465_v56 }
  0x43   :  { %445 = vmatpush3.bf16.msra.mxu1 %v444_v41  ;;  %467 = vmatprep.subr.bf16.mxu0 %v537_v1 }
  0x44   :  { %446 = vmatprep.subr.bf16.mxu1 %v537_v1 }
  0x46   :  { %469 = vmatpush3.bf16.msra.mxu0 %v468_v59 }
  0x47   :  { %448 = vmatpush3.bf16.msra.mxu1 %v447_v44  ;;  %470 = vmatprep.subr.bf16.mxu0 %v537_v1  ;;  %v85_v1 = vsub.s32 2, %v76_v0 }
  0x49   :  { %v86_v12 = vrot.slane %v73_v3, %v85_v1 }
  0x4a   :  { %384 = vmatmul.mubr.msk.f32.vlgmr.msra.gmra.mrb[2].mxu1 %vm90_vm1, %v48_v34  ;;  %472 = vmatpush3.bf16.msra.mxu0 %v471_v62 }
 0x10d   :  { %v160_v7 = vpop.f32.mrb[0].mxu1 }
 0x10e   :  { %v161_v8 = vadd.f32 %v160_v7, %v78_v5  ;;  %v162_v9 = vpop.f32.mrb[1].mxu1 }
 0x10f   :  { %v163_v10 = vadd.f32 %v162_v9, %v82_v6 }
 0x111   :  { %v235_v11 = vmul.f32 %v163_v10, %v161_v8 }
 0x11d   :  { %v231_v13 = vpop.f32.mrb[2].mxu1 }
 0x11e   :  { %v232_v14 = vadd.f32 %v231_v13, %v86_v12  ;;  %v385_v15 = vpop.f32.mrb[3].mxu1 }
 0x120   :  { %v236_v16 = vadd.f32 %v235_v11, %v232_v14 }
 0x122   :  { %v237_v17 = vmax.f32 %v236_v16, 0.0 }
 0x124   :  { %419 = vmatmul.mubr.f32.vlgmr.msra.gmra.mrb[0].mxu0 %v237_v17 }
 0x1f7   :  { %v327_v19 = vpop.f32.mrb[0].mxu0 }
 0x1f8   :  { %v328_v20 = vadd.f32 %v340_v18, %v327_v19  ;;  %v420_v21 = vpop.f32.mrb[1].mxu0 }
 0x1fa   :  { %331 = vst [vmem:[%s626_s5] sm:$0xff] %v328_v20 }
 0x1fb   :  { %336 = vsyncpa [#allocation3], 1 }
 0x1fc   :  { %337 = vsyncpa [#allocation5], 1 }

</bundles_post_ra>
